<compile_context>
chip_gen: v6e
topology: v6e:2x2x1
jax: 0.10.0
libtpu: 0.0.40
codegen_flags: <defaults>
</compile_context>

<pallas_src>
import jax
import jax.numpy as jnp
from jax.experimental import pallas as pl
from jax.experimental.pallas import tpu as pltpu

EPS = 1e-5          # BatchNorm1d eps
NEG_SLOPE = 0.01    # PyTorch LeakyReLU default
LANE = 128


def _bn_train(x, gamma, beta):
    # BatchNorm1d, training mode: biased batch variance, eps=1e-5.
    mu = jnp.mean(x, axis=0, keepdims=True)
    var = jnp.mean((x - mu) * (x - mu), axis=0, keepdims=True)
    return (x - mu) * jax.lax.rsqrt(var + EPS) * gamma + beta


def _leaky_relu(x):
    return jnp.where(x > 0, x, NEG_SLOPE * x)


def _tpu_vmem_capacity_bytes():
    """Physical VMEM per core (128 MiB v5e/v6e, 64 MiB v7x); conservative fallback."""
    try:
        info = pltpu.get_tpu_info()
        for attr in ("vmem_capacity_bytes", "vmem_bytes", "vmem_size_bytes"):
            v = getattr(info, attr, None)
            if v:
                return int(v)
    except Exception:
        pass
    return 64 << 20


def _choose_hw_tile(N, c_tile, HW, itemsize, budget_bytes):
    """Largest multiple-of-128 spatial tile whose double-buffered input blocks fit."""
    if HW < LANE:
        return HW                                   # single full-extent block
    max_from_hw = (HW // LANE) * LANE
    per_lane = N * c_tile * itemsize * 2            # x2: BlockSpec double buffering
    from_budget = max(LANE, (budget_bytes // per_lane) // LANE * LANE)
    return int(min(max_from_hw, from_budget))


# --------------------------------------------------------------------------- #
# Kernel A: streamed lane-wise spatial pooling                                 #
# --------------------------------------------------------------------------- #
def _make_pool_kernel(N, c_tile, HW, hw_tile, grid_k):
    small_hw = HW < LANE
    n_chunks = 1 if small_hw else hw_tile // LANE
    needs_mask = (not small_hw) and (HW % hw_tile != 0)
    last_k = grid_k - 1

    def plain_sum(block):
        # Fold hw_tile lanes into 128 with elementwise VPU adds (no XLU reduce).
        s = block[:, :, 0:LANE]
        for i in range(1, n_chunks):
            s = s + block[:, :, i * LANE:(i + 1) * LANE]
        return s

    def tail_sum(block):
        # Only the final spatial step pays for the out-of-range mask.
        base = last_k * hw_tile
        s = jnp.zeros((N, c_tile, LANE), jnp.float32)
        for i in range(n_chunks):
            lo = base + i * LANE
            if lo >= HW:
                break                               # chunk entirely out of range
            chunk = block[:, :, i * LANE:(i + 1) * LANE]
            if lo + LANE > HW:                      # straddling chunk -> mask it
                lane = jax.lax.broadcasted_iota(jnp.int32, (N, c_tile, LANE), 2)
                chunk = jnp.where(lane < (HW - lo), chunk, 0.0)
            s = s + chunk
        return s

    def kernel(feats_ref, part_ref):
        k = pl.program_id(1)

        @pl.when(k == 0)
        def _():
            part_ref[...] = jnp.zeros_like(part_ref)

        block = feats_ref[...].astype(jnp.float32)  # allows bf16 streaming, f32 accum

        if small_hw:
            pad = jnp.zeros((N, c_tile, LANE - HW), jnp.float32)
            part_ref[...] += jnp.concatenate([block, pad], axis=-1)
        elif not needs_mask:
            part_ref[...] += plain_sum(block)
        else:
            @pl.when(k < last_k)
            def _():
                part_ref[...] += plain_sum(block)

            @pl.when(k == last_k)
            def _():
                part_ref[...] += tail_sum(block)

    return kernel


# --------------------------------------------------------------------------- #
# Kernel B: tiny MLP encoder + heads on the pooled activations (runs once)     #
# --------------------------------------------------------------------------- #
def _make_epilogue_kernel(inv_hw):
    def kernel(part_ref,
               w1_ref, b1_ref, g1_ref, be1_ref,
               w2_ref, b2_ref, g2_ref, be2_ref,
               w3_ref, b3_ref, g3_ref, be3_ref,
               wm_ref, bm_ref, wd_ref, bd_ref, wc_ref, bc_ref,
               set_ref, cls_ref, mix_ref):
        # Single deferred cross-lane reduction: adaptive_avg_pool2d -> (N, C).
        feats = jnp.sum(part_ref[...], axis=-1) * inv_hw

        h = jnp.dot(feats, w1_ref[...], preferred_element_type=jnp.float32) + b1_ref[...]
        h = _leaky_relu(_bn_train(h, g1_ref[...], be1_ref[...]))
        h = jnp.dot(h, w2_ref[...], preferred_element_type=jnp.float32) + b2_ref[...]
        h = _leaky_relu(_bn_train(h, g2_ref[...], be2_ref[...]))
        h = jnp.dot(h, w3_ref[...], preferred_element_type=jnp.float32) + b3_ref[...]
        h = _leaky_relu(_bn_train(h, g3_ref[...], be3_ref[...]))

        # Encoder's final Linear (w4, b4) is folded into the mix head on the host.
        mix = jax.nn.sigmoid(
            jnp.dot(h, wm_ref[...], preferred_element_type=jnp.float32) + bm_ref[...])

        set_info = feats * mix
        class_info = feats - set_info
        set_ref[...] = (
            jnp.dot(set_info, wd_ref[...], preferred_element_type=jnp.float32) + bd_ref[...])
        cls_ref[...] = (
            jnp.dot(class_info, wc_ref[...], preferred_element_type=jnp.float32) + bc_ref[...])
        mix_ref[...] = mix

    return kernel


# --------------------------------------------------------------------------- #
# Wrapper                                                                      #
# --------------------------------------------------------------------------- #
def component_modeller_forward(feats_nchw, params, *, hw_tile=None, c_tile=None):
    """feats_nchw: (N, C, H, W).  Returns (set_preds, class_preds, mix_factor)."""
    N, C, H, W = feats_nchw.shape
    K = params["wc"].shape[1]
    HW = H * W
    feats3 = feats_nchw.reshape(N, C, HW)
    itemsize = jnp.dtype(feats3.dtype).itemsize

    # Generation-aware VMEM / tile budgets (v5e/v6e: 128 MiB -> 96 MiB scoped;
    # v7x: 64 MiB -> 48 MiB scoped; ~45% of that for double-buffered feats blocks).
    vmem_cap = _tpu_vmem_capacity_bytes()
    vmem_limit = int(max(32 << 20, min(vmem_cap * 3 // 4, 96 << 20)))

    if c_tile is None:
        c_tile = C // 2 if (C >= 16 and (C // 2) % 8 == 0) else C
    assert C % c_tile == 0 and (c_tile % 8 == 0 or c_tile == C)
    n_c = C // c_tile

    if hw_tile is None:
        hw_tile = _choose_hw_tile(N, c_tile, HW, itemsize, (vmem_limit * 45) // 100)
    assert hw_tile <= HW
    assert HW < LANE or hw_tile % LANE == 0
    grid_k = pl.cdiv(HW, hw_tile)

    # --- Kernel A: streamed lane-wise spatial pooling --------------------------
    partial = pl.pallas_call(
        _make_pool_kernel(N, c_tile, HW, hw_tile, grid_k),
        out_shape=jax.ShapeDtypeStruct((N, C, LANE), jnp.float32),
        grid_spec=pltpu.PrefetchScalarGridSpec(
            num_scalar_prefetch=0,
            grid=(n_c, grid_k),
            in_specs=[pl.BlockSpec((N, c_tile, hw_tile), lambda ci, k: (0, ci, k))],
            out_specs=pl.BlockSpec((N, c_tile, LANE), lambda ci, k: (0, ci, 0)),
        ),
        compiler_params=pltpu.CompilerParams(
            dimension_semantics=("parallel", "arbitrary"),
            vmem_limit_bytes=vmem_limit,
        ),
        cost_estimate=pl.CostEstimate(
            flops=int(N * C * HW),
            transcendentals=0,
            bytes_accessed=int(feats3.size * itemsize + N * C * LANE * 4),
        ),
    )(feats3)

    # --- fold encoder Linear (w4, b4) into the mix head (host-side, tiny) ------
    hp = jax.lax.Precision.HIGHEST
    wm_f = jnp.dot(params["w4"], params["wm"], precision=hp)
    bm_f = jnp.dot(params["b4"], params["wm"], precision=hp) + params["bm"]

    # --- Kernel B: MLP + heads, runs once on the pooled partials ---------------
    set_preds, class_preds, mix_factor = pl.pallas_call(
        _make_epilogue_kernel(1.0 / float(HW)),
        out_shape=(
            jax.ShapeDtypeStruct((N, 1), jnp.float32),
            jax.ShapeDtypeStruct((N, K), jnp.float32),
            jax.ShapeDtypeStruct((N, C), jnp.float32),
        ),
        compiler_params=pltpu.CompilerParams(vmem_limit_bytes=vmem_limit),
    )(partial,
      params["w1"], params["b1"], params["g1"], params["be1"],
      params["w2"], params["b2"], params["g2"], params["be2"],
      params["w3"], params["b3"], params["g3"], params["be3"],
      wm_f, bm_f, params["wd"], params["bd"], params["wc"], params["bc"])

    return set_preds, class_preds, mix_factor


# --------------------------------------------------------------------------- #
# Params + pure-JAX reference                                                  #
# --------------------------------------------------------------------------- #
def init_params(key, in_channels, num_classes):
    """Deterministic synthetic init (PyTorch-Linear-style uniform bounds)."""
    C = in_channels
    C2 = in_channels // 2

    def linear(key, fan_in, fan_out):
        kw, kb = jax.random.split(key)
        bound = 1.0 / jnp.sqrt(fan_in)
        w = jax.random.uniform(kw, (fan_in, fan_out), jnp.float32, -bound, bound)
        b = jax.random.uniform(kb, (1, fan_out), jnp.float32, -bound, bound)
        return w, b

    keys = jax.random.split(key, 8)
    w1, b1 = linear(keys[0], C, C2)
    w2, b2 = linear(keys[1], C2, C2)
    w3, b3 = linear(keys[2], C2, C2)
    w4, b4 = linear(keys[3], C2, C)
    wm, bm = linear(keys[4], C, C)
    wd, bd = linear(keys[5], C, 1)
    wc, bc = linear(keys[6], C, num_classes)

    ones2 = jnp.ones((1, C2), jnp.float32)
    zeros2 = jnp.zeros((1, C2), jnp.float32)

    return dict(
        w1=w1, b1=b1, g1=ones2, be1=zeros2,
        w2=w2, b2=b2, g2=ones2, be2=zeros2,
        w3=w3, b3=b3, g3=ones2, be3=zeros2,
        w4=w4, b4=b4,
        wm=wm, bm=bm,
        wd=wd, bd=bd,
        wc=wc, bc=bc,
    )


def reference_forward(feats_nchw, p):
    """Pure-JAX reference mirroring the PyTorch module (unfused)."""
    feats = jnp.mean(feats_nchw, axis=(2, 3))

    def bn(x, g, b):
        mu = jnp.mean(x, axis=0, keepdims=True)
        var = jnp.mean((x - mu) ** 2, axis=0, keepdims=True)
        return (x - mu) / jnp.sqrt(var + EPS) * g + b

    def lrelu(x):
        return jnp.where(x > 0, x, NEG_SLOPE * x)

    h = lrelu(bn(feats @ p["w1"] + p["b1"], p["g1"], p["be1"]))
    h = lrelu(bn(h @ p["w2"] + p["b2"], p["g2"], p["be2"]))
    h = lrelu(bn(h @ p["w3"] + p["b3"], p["g3"], p["be3"]))
    emb = h @ p["w4"] + p["b4"]
    mix = jax.nn.sigmoid(emb @ p["wm"] + p["bm"])
    set_info = feats * mix
    set_preds = set_info @ p["wd"] + p["bd"]
    class_info = feats - set_info
    class_preds = class_info @ p["wc"] + p["bc"]
    return set_preds, class_preds, mix


if __name__ == "__main__":
    N, C, H, W = 8, 32, 16, 16
    NUM_CLASSES = 4

    key = jax.random.PRNGKey(0)
    k_feats, k_params, k_feats2 = jax.random.split(key, 3)
    feats = jax.random.normal(k_feats, (N, C, H, W), jnp.float32)
    params = init_params(k_params, C, NUM_CLASSES)

    def check(outs, refs):
        for o, r in zip(outs, refs):
            assert o.shape == r.shape
            assert jnp.allclose(o, r, atol=1e-4, rtol=1e-4)

    # 1) Auto-tiled path (budget-sized hw_tile; 2 parallel channel slices).
    outs = jax.block_until_ready(component_modeller_forward(feats, params))
    refs = reference_forward(feats, params)
    assert outs[0].shape == (N, 1)
    assert outs[1].shape == (N, NUM_CLASSES)
    assert outs[2].shape == (N, C)
    check(outs, refs)

    # 2) Forced multi-step streaming: HW=256 as two unmasked 128-lane tiles/slice.
    outs2 = jax.block_until_ready(
        component_modeller_forward(feats, params, hw_tile=128))
    check(outs2, refs)

    # 3) Partial-last-tile regression (HW=320 -> 256-lane tiles, masked tail step).
    feats2 = jax.random.normal(k_feats2, (N, C, 16, 20), jnp.float32)
    outs3 = jax.block_until_ready(component_modeller_forward(feats2, params))
    refs3 = reference_forward(feats2, params)
    check(outs3, refs3)

    print("KERNEL_OK")
</pallas_src>

<mosaic_0001>
module attributes {stable_mosaic.version = 11 : i64} {
  func.func @kernel(%arg0: i32, %arg1: i32, %arg2: memref<8x16x256xf32, #tpu.memory_space<vmem>>, %arg3: memref<8x16x128xf32, #tpu.memory_space<vmem>>) attributes {dimension_semantics = [#tpu.dimension_semantics<parallel>, #tpu.dimension_semantics<arbitrary>], iteration_bounds = array<i64: 2, 1>, scalar_prefetch = 0 : i64, scratch_operands = 0 : i64, tpu.core_type = #tpu.core_type<tc>, window_params = [{transform_indices = @transform_0, window_bounds = array<i64: 8, 16, 256>}, {transform_indices = @transform_1, window_bounds = array<i64: 8, 16, 128>}]} {
    %c0_i32 = arith.constant 0 : i32
    %0 = arith.cmpi eq, %arg1, %c0_i32 : i32
    %1 = arith.extui %0 : i1 to i32
    %c0_i32_0 = arith.constant 0 : i32
    %2 = arith.cmpi ne, %1, %c0_i32_0 : i32
    scf.if %2 {
      %cst = arith.constant 0.000000e+00 : f32
      %10 = vector.broadcast %cst : f32 to vector<8x16x128xf32>
      %c0_9 = arith.constant 0 : index
      %c0_10 = arith.constant 0 : index
      %c0_11 = arith.constant 0 : index
      %11 = vector.load %arg3[%c0_9, %c0_10, %c0_11] : memref<8x16x128xf32, #tpu.memory_space<vmem>>, vector<8x16x128xf32>
      tpu.vector_store %arg3[%c0_9, %c0_10, %c0_11], %10 {strides = array<i32>} : memref<8x16x128xf32, #tpu.memory_space<vmem>>, vector<8x16x128xf32>,
    } else {
    }
    %c0 = arith.constant 0 : index
    %c0_1 = arith.constant 0 : index
    %c0_2 = arith.constant 0 : index
    %3 = vector.load %arg2[%c0, %c0_1, %c0_2] : memref<8x16x256xf32, #tpu.memory_space<vmem>>, vector<8x16x256xf32>
    %c0_3 = arith.constant 0 : index
    %c0_4 = arith.constant 0 : index
    %c0_5 = arith.constant 0 : index
    %4 = vector.load %arg3[%c0_3, %c0_4, %c0_5] : memref<8x16x128xf32, #tpu.memory_space<vmem>>, vector<8x16x128xf32>
    %5 = vector.extract_strided_slice %3 {offsets = [0, 0, 0], sizes = [8, 16, 128], strides = [1, 1, 1]} : vector<8x16x256xf32> to vector<8x16x128xf32>
    %6 = vector.extract_strided_slice %3 {offsets = [0, 0, 128], sizes = [8, 16, 128], strides = [1, 1, 1]} : vector<8x16x256xf32> to vector<8x16x128xf32>
    %7 = arith.addf %5, %6 : vector<8x16x128xf32>
    %8 = arith.addf %4, %7 : vector<8x16x128xf32>
    %c0_6 = arith.constant 0 : index
    %c0_7 = arith.constant 0 : index
    %c0_8 = arith.constant 0 : index
    %9 = vector.load %arg3[%c0_6, %c0_7, %c0_8] : memref<8x16x128xf32, #tpu.memory_space<vmem>>, vector<8x16x128xf32>
    tpu.vector_store %arg3[%c0_6, %c0_7, %c0_8], %8 {strides = array<i32>} : memref<8x16x128xf32, #tpu.memory_space<vmem>>, vector<8x16x128xf32>,
    return
  }
  func.func @transform_0(%arg0: i32, %arg1: i32) -> (i32, i32, i32) {
    %c0_i32 = arith.constant 0 : i32
    %c0_i32_0 = arith.constant 0 : i32
    return %c0_i32, %arg0, %arg1 : i32, i32, i32
  }
  func.func @transform_1(%arg0: i32, %arg1: i32) -> (i32, i32, i32) {
    %c0_i32 = arith.constant 0 : i32
    %c0_i32_0 = arith.constant 0 : i32
    %c0_i32_1 = arith.constant 0 : i32
    return %c0_i32, %arg0, %c0_i32_0 : i32, i32, i32
  }
}

</mosaic_0001>

<bundles_post_ra>
// kernel: tpu_custom_call.1
= control target key start
LH: loop header
LB: loop body
LE: loop exit
PB: predicated region body
PF: predicated region fallthrough
CT: control target
= control target key end

     0   :  { %6 = vsyncpa [#allocation3], 0  ;;  %s794_s0 = inlined_call_operand.hbm [shape: f32[8,32,256], index: 0, kind: input, shape index: {}]   ;;  %s795_s1 = inlined_call_operand.hbm [shape: f32[8,32,128], index: 1, kind: output, shape index: {}]  }
   0x1   :  { %8 = vsyncpa [#allocation3 + $0x1], 0 }
   0x2   :  { %9 = vsyncpa [#allocation4], 0 }
   0x3   :  { %11 = vsyncpa [#allocation4 + $0x1], 0  ;;  %s601_s6 = smov 0   ;;  %s603_s7 = smov 0  }
   0x4   :  { %s605_s8 = smov 0   ;;  %s607_s9 = smov 0  }
   0x5   :  { %s609_s10 = smov 0   ;;  %s611_s11 = smov 0  }
   0x6 LB: > { %s417_s12 = sadd.s32 4294967295, %s576_s11   ;;  %s418_s13 = sadd.s32 4294967294, %s576_s11   ;;  %s576_s11 = sphi %s611_s11, %s17_s11   ;;  %s572_s10 = sphi %s609_s10, %s804_s10   ;;  %s568_s9 = sphi %s607_s9, %s803_s9   ;;  %s564_s8 = sphi %s605_s8, %s802_s8   ;;  %s560_s7 = sphi %s603_s7, %s801_s7   ;;  %s556_s6 = sphi %s601_s6, %s800_s6  }
   0x7   : > { %s29_s14 = sadd.s32 1, %s572_s10  ;;  %s38_s15 = sadd.s32 1, %s564_s8 }
   0x8   : > { %p31_p0 = scmp.ge.s32.totalorder %s29_s14, 2  ;;  %p45_p1 = scmp.ne.s32.totalorder %s564_s8, %s560_s7 }
   0x9   : > { %p46_p2 = scmp.eq.s32.totalorder %s576_s11, 0  ;;  %p51_p3 = scmp.ne.s32.totalorder %s560_s7, %s556_s6 }
   0xa   : > { %s806_s14 = smov (%p31_p0, %s29_s14), 0  ;;  %p52_p5 = scmp.eq.s32.totalorder %s417_s12, 0 }
   0xb   : > { %p642_p4 = por %p46_p2, %p45_p1  ;;  %s33_s17 = ssub.s32 %s572_s10, %s806_s14 }
   0xc   : > { %p75_p6 = scmp.eq.s32.totalorder %s417_s12, 1  ;;  %p36_p7 = scmp.eq.s32.totalorder %s33_s17, 0 }
   0xd   : > { %p648_p8 = por %p52_p5, %p51_p3  ;;  %p81_p10 = scmp.eq.s32.totalorder %s418_s13, 1 }
   0xe   : > { %p652_p9 = por %p75_p6, %p45_p1  ;;  %p420_p12 = scmp.ge.s32.totalorder %s576_s11, 2 }
   0xf   : > { %s657_s20 = scalar_select %p36_p7, %s564_s8, %s38_s15  }
  0x10   : > { %p659_p11 = por %p81_p10, %p51_p3  ;;  %97 = sbr.rel (%p420_p12) target bundleno = 34 (0x22), region = 16 }
  0x15   : > { %s101_s22 = sand.u32 1, %s564_s8   ;;  %s436_s23 = sshll.u32 %s572_s10, 9 }
  0x16   : > { %s421_s24 = sshll.u32 %s101_s22, 8  ;;  %s114_s27 = scalar_lea.hbm %s794_s0, %s436_s23 }
  0x17   : > { %s438_s28 = scalar_select %p642_p4, [#allocation0], [#allocation10] }
  0x18   : > { %s105_s29 = scalar_lea.vmem [#allocation2], %s421_s24  ;;  %s578_s3 = smov 1024  }
  0x19   : > { %s127_s30 = sshll.u32 %s105_s29, 4  ;;  %s119_s2 = sld [smem:[%s438_s28]]   ;;  %s128_s30 = int_to_ptr.vmem [resolvable:$true] %s127_s30 }
  0x1a   : > { %439 = sst [smem:[#allocation7]] (%p642_p4), %s578_s3  ;;  %s579_s4 = smov 512  }
  0x1b   : > { %440 = sst [smem:[#allocation7 + $0x1]] (%p642_p4), %s579_s4  ;;  %s580_s5 = smov 2  }
  0x1c   : > { %441 = sst [smem:[#allocation7 + $0x2]] (%p642_p4), %s580_s5  ;;  %s581_s12 = smov 256  }
  0x1d   : > { %442 = sst [smem:[#allocation7 + $0x3]] (%p642_p4), %s581_s12  ;;  %s582_s15 = smov 16  }
  0x1e   : > { %443 = sst [smem:[#allocation7 + $0x4]] (%p642_p4), %s581_s12  ;;  %s102_s23 = scalar_lea.sflag [#allocation3], %s101_s22 }
  0x1f   : > { %s425_s13 = sshll.u32 %s119_s2, 26  ;;  %444 = sst [smem:[#allocation7 + $0x5]] (%p642_p4), %s582_s15 }
  0x20   : > { %s426_s17 = sadd.s32 134217728, %s425_s13  ;;  %s583_s24 = smov 131072  }
  0x21   : > { %445 = dma.general (%p642_p4), %s114_s27, 4096, %s128_s30, %s102_s23, %s583_s24, [#allocation7], %s426_s17, 0  }
  0x22 PF: > { %p427_p13 = scmp.ge.s32.totalorder %s576_s11, 1  ;;  %p148_p0 = scmp.lt.s32.totalorder %s576_s11, 3 }
  0x24   : > { %p149_p1 = pnand %p427_p13, %p148_p0 }
  0x25   : > { %s690_s25 = sand.u32 (!%p149_p1), 1, %s560_s7  }
  0x26   : > { %152 = sbr.rel (%p149_p1) target bundleno = 68 (0x44), region = 24  ;;  %s428_s26 = sshll.u32 (!%p149_p1), %s690_s25, 8 }
  0x27   : > { %s155_s28 = scalar_lea.sflag (!%p149_p1), [#allocation3], %s690_s25  ;;  %s694_s29 = scalar_lea.vmem (!%p149_p1), [#allocation2], %s428_s26 }
  0x2b   : > { %547 = dma.done.wait (%p648_p8), %s155_s28, 4096  }
  0x2c   : > { %549 = vsyncadd (%p648_p8), %s155_s28, 4294963200  ;;  %s429_s16 = sshll.u32 %s690_s25, 7  ;;  %v200_v0 = vld [vmem:[%s694_s29] sm:$0xff]  ;;  %v201_v1 = vld [vmem:[%s694_s29 + $0x8] sm:$0xff]  ;;  %s297_s22 = scalar_lea.sflag [#allocation4], %s690_s25 }
  0x2d   : > { %v202_v2 = vld [vmem:[%s694_s29 + $0x10] sm:$0xff]  ;;  %v248_v3 = vadd.f32 %v201_v1, %v200_v0  ;;  %v203_v4 = vld [vmem:[%s694_s29 + $0x18] sm:$0xff]  ;;  %v204_v5 = vld [vmem:[%s694_s29 + $0x20] sm:$0xff]  ;;  %s716_s18 = scalar_lea.vmem [#allocation5], %s429_s16 }
  0x2e   : > { %v205_v6 = vld [vmem:[%s694_s29 + $0x28] sm:$0xff]  ;;  %v249_v7 = vadd.f32 %v203_v4, %v202_v2  ;;  %v206_v9 = vld [vmem:[%s694_s29 + $0x30] sm:$0xff]  ;;  %v207_v10 = vld [vmem:[%s694_s29 + $0x38] sm:$0xff] }
  0x2f   : > { %v250_v8 = vadd.f32 %v205_v6, %v204_v5  ;;  %v208_v11 = vld [vmem:[%s694_s29 + $0x40] sm:$0xff]  ;;  %v251_v12 = vadd.f32 %v207_v10, %v206_v9  ;;  %v209_v13 = vld [vmem:[%s694_s29 + $0x48] sm:$0xff]  ;;  %v210_v14 = vld [vmem:[%s694_s29 + $0x50] sm:$0xff]  ;;  %280 = vst [vmem:[%s716_s18] sm:$0xff] %v248_v3 }
  0x30   : > { %v211_v15 = vld [vmem:[%s694_s29 + $0x58] sm:$0xff]  ;;  %v252_v16 = vadd.f32 %v209_v13, %v208_v11  ;;  %v212_v18 = vld [vmem:[%s694_s29 + $0x60] sm:$0xff]  ;;  %v213_v19 = vld [vmem:[%s694_s29 + $0x68] sm:$0xff]  ;;  %281 = vst [vmem:[%s716_s18 + $0x8] sm:$0xff] %v249_v7 }
  0x31   : > { %v253_v17 = vadd.f32 %v211_v15, %v210_v14  ;;  %v214_v20 = vld [vmem:[%s694_s29 + $0x70] sm:$0xff]  ;;  %v254_v21 = vadd.f32 %v213_v19, %v212_v18  ;;  %v215_v22 = vld [vmem:[%s694_s29 + $0x78] sm:$0xff]  ;;  %v216_v23 = vld [vmem:[%s694_s29 + $0x80] sm:$0xff]  ;;  %282 = vst [vmem:[%s716_s18 + $0x10] sm:$0xff] %v250_v8 }
  0x32   : > { %v217_v24 = vld [vmem:[%s694_s29 + $0x88] sm:$0xff]  ;;  %v255_v25 = vadd.f32 %v215_v22, %v214_v20  ;;  %v218_v27 = vld [vmem:[%s694_s29 + $0x90] sm:$0xff]  ;;  %v219_v28 = vld [vmem:[%s694_s29 + $0x98] sm:$0xff]  ;;  %283 = vst [vmem:[%s716_s18 + $0x18] sm:$0xff] %v251_v12 }
  0x33   : > { %v256_v26 = vadd.f32 %v217_v24, %v216_v23  ;;  %v220_v29 = vld [vmem:[%s694_s29 + $0xa0] sm:$0xff]  ;;  %v257_v30 = vadd.f32 %v219_v28, %v218_v27  ;;  %v221_v31 = vld [vmem:[%s694_s29 + $0xa8] sm:$0xff]  ;;  %v222_v32 = vld [vmem:[%s694_s29 + $0xb0] sm:$0xff]  ;;  %284 = vst [vmem:[%s716_s18 + $0x20] sm:$0xff] %v252_v16 }
  0x34   : > { %v223_v33 = vld [vmem:[%s694_s29 + $0xb8] sm:$0xff]  ;;  %285 = vst [vmem:[%s716_s18 + $0x28] sm:$0xff] %v253_v17  ;;  %v258_v34 = vadd.f32 %v221_v31, %v220_v29  ;;  %v224_v36 = vld [vmem:[%s694_s29 + $0xc0] sm:$0xff]  ;;  %v225_v37 = vld [vmem:[%s694_s29 + $0xc8] sm:$0xff] }
  0x35   : > { %v259_v35 = vadd.f32 %v223_v33, %v222_v32  ;;  %v226_v38 = vld [vmem:[%s694_s29 + $0xd0] sm:$0xff]  ;;  %286 = vst [vmem:[%s716_s18 + $0x30] sm:$0xff] %v254_v21  ;;  %v260_v39 = vadd.f32 %v225_v37, %v224_v36  ;;  %v227_v40 = vld [vmem:[%s694_s29 + $0xd8] sm:$0xff]  ;;  %v228_v41 = vld [vmem:[%s694_s29 + $0xe0] sm:$0xff] }
  0x36   : > { %v229_v42 = vld [vmem:[%s694_s29 + $0xe8] sm:$0xff]  ;;  %287 = vst [vmem:[%s716_s18 + $0x38] sm:$0xff] %v255_v25  ;;  %288 = vst [vmem:[%s716_s18 + $0x40] sm:$0xff] %v256_v26  ;;  %v261_v43 = vadd.f32 %v227_v40, %v226_v38  ;;  %v230_v45 = vld [vmem:[%s694_s29 + $0xf0] sm:$0xff] }
  0x37   : > { %v262_v44 = vadd.f32 %v229_v42, %v228_v41  ;;  %v231_v46 = vld [vmem:[%s694_s29 + $0xf8] sm:$0xff]  ;;  %289 = vst [vmem:[%s716_s18 + $0x48] sm:$0xff] %v257_v30  ;;  %290 = vst [vmem:[%s716_s18 + $0x50] sm:$0xff] %v258_v34 }
  0x38   : > { %v263_v47 = vadd.f32 %v231_v46, %v230_v45  ;;  %291 = vst [vmem:[%s716_s18 + $0x58] sm:$0xff] %v259_v35  ;;  %292 = vst [vmem:[%s716_s18 + $0x60] sm:$0xff] %v260_v39 }
  0x39   : > { %293 = vst [vmem:[%s716_s18 + $0x68] sm:$0xff] %v261_v43  ;;  %294 = vst [vmem:[%s716_s18 + $0x70] sm:$0xff] %v262_v44 }
  0x3a   : > { %295 = vst [vmem:[%s716_s18 + $0x78] sm:$0xff] %v263_v47 }
  0x3b   : > { %s437_s27 = sshll.u32 %s568_s9, 8  ;;  %s320_s30 = sshll.u32 %s716_s18, 4  ;;  %s321_s30 = int_to_ptr.vmem [resolvable:$true] %s320_s30 }
  0x3c   : > { %s309_s4 = scalar_lea.hbm %s795_s1, %s437_s27  ;;  %s584_s5 = smov 256  }
  0x3d   : > { %447 = sst [smem:[#allocation9]] (%p652_p9), %s584_s5  ;;  %s585_s12 = smov 512  }
  0x3e   : > { %448 = sst [smem:[#allocation9 + $0x1]] (%p652_p9), %s585_s12  ;;  %s586_s13 = smov 2  }
  0x3f   : > { %449 = sst [smem:[#allocation9 + $0x2]] (%p652_p9), %s586_s13  ;;  %s587_s15 = smov 128  }
  0x40   : > { %450 = sst [smem:[#allocation9 + $0x3]] (%p652_p9), %s587_s15  ;;  %s588_s9 = smov 8  }
  0x41   : > { %451 = sst [smem:[#allocation9 + $0x4]] (%p652_p9), %s587_s15  ;;  %s589_s17 = smov 131072  }
  0x42   : > { %452 = sst [smem:[#allocation9 + $0x5]] (%p652_p9), %s588_s9  ;;  %s590_s23 = smov 0  }
  0x43   : > { %453 = dma.general (%p652_p9), %s321_s30, 2048, %s309_s4, %s297_s22, %s589_s17, [#allocation9], %s590_s23, 0  }
  0x44 PF: > { %s348_s24 = sand.u32 1, %s556_s6   ;;  %p456_p2 = pnand %p420_p12, %p659_p11 }
  0x45   : > { %s349_s25 = scalar_lea.sflag [#allocation4], %s348_s24 }
  0x46   : > { %p457_p3 = pneg %p456_p2 }
  0x48   : > { %551 = dma.done.wait (%p457_p3), %s349_s25, 2048  }
  0x49   : > { %553 = vsyncadd (%p457_p3), %s349_s25, 4294965248  ;;  %s17_s11 = sadd.s32 1, %s576_s11   ;;  %s800_s6 = smov %s560_s7 }
  0x4a   : > { %p14_p4 = scmp.ge.s32.totalorder %s17_s11, 4   ;;  %s801_s7 = smov %s564_s8 }
  0x4b   : > { %s802_s8 = smov %s657_s20  ;;  %s803_s9 = smov %s572_s10 }
  0x4c   : > { %s804_s10 = smov %s806_s14  ;;  %16 = sbr.rel (!%p14_p4) target bundleno = 6 (0x6), region = 83 }
  0x51   :  { %354 = vsyncpa [#allocation3], 1 }
  0x52   :  { %356 = vsyncpa [#allocation3 + $0x1], 1 }
  0x53   :  { %357 = vsyncpa [#allocation4], 1 }
  0x54   :  { %359 = vsyncpa [#allocation4 + $0x1], 1 }

</bundles_post_ra>
